<compile_context>
chip_gen: v7x
topology: tpu7x:2x2x1
jax: 0.10.0
libtpu: 0.0.40
codegen_flags: <defaults>
</compile_context>

<pallas_src>
import functools

import jax
import jax.numpy as jnp
from jax.experimental import pallas as pl
from jax.experimental.pallas import tpu as pltpu

_LANE = 128
_SUBLANE = 8
_MAX_BLOCK_ROWS = 2048   # rows of 128 lanes per grid step (~1 MiB per input block)


def _bce_terms(p, t):
    # Matches torch.nn.BCELoss per element: -(t*log(p) + (1-t)*log(1-p)),
    # with logs clamped at -100 (PyTorch's internal clamp).
    logp = jnp.maximum(jnp.log(p), -100.0)
    log1mp = jnp.maximum(jnp.log(1.0 - p), -100.0)
    return -(t * logp + (1.0 - t) * log1mp)


def _sig(x):
    # tanh-form sigmoid: one EUP transcendental instead of exp + divide.
    return 0.5 * (jnp.tanh(0.5 * x) + 1.0)


def _loss_kernel(z1o_ref, z1p_ref, z2o_ref, z2p_ref, tgt_ref, alpha_ref,
                 out_ref, *, lambda_reg, n_valid, block_rows):
    """Each input ref is a (block_rows, 128) f32 tile; out is (1, 3, 8, 128)."""
    i = pl.program_id(0)

    z1o = z1o_ref[...]
    z1p = z1p_ref[...]
    z2o = z2o_ref[...]
    z2p = z2p_ref[...]
    tgt = tgt_ref[...]
    alpha = alpha_ref[...]

    # In-kernel validity mask (replaces the DMA'd mask plane): flat index of
    # element (row, lane) within the padded layout, compared against true B.
    row = jax.lax.broadcasted_iota(jnp.int32, (block_rows, _LANE), 0)
    lane = jax.lax.broadcasted_iota(jnp.int32, (block_rows, _LANE), 1)
    flat = (i * block_rows + row) * _LANE + lane
    valid = (flat < n_valid).astype(jnp.float32)

    # ---- term 1: BCE(p_other, target == 3), mean over all B (divide in JAX) --
    p_other = 1.0 - _sig(-z1o) * _sig(-z2o)
    t_other = (tgt == 3.0).astype(jnp.float32)
    term_other = valid * _bce_terms(p_other, t_other)

    # ---- terms 2+3 fused: masked BCE on p_diff + L1 reg (same denominator) ---
    mask = valid * (tgt != 3.0).astype(jnp.float32)
    # gamma = 2**alpha.  NOTE: overflows to +inf for very large alpha; 0 * inf
    # then gives NaN if z1p == z2p exactly — identical float semantics to the
    # PyTorch module and the pure-JAX reference, so not a divergence.
    gamma = jnp.exp(alpha * 0.6931471805599453)          # ln(2)
    p_diff = _sig((z1p - z2p) * gamma)
    t_no = jnp.where(tgt == 0.0, 1.0, jnp.where(tgt == 1.0, 0.5, 0.0))
    fused = _bce_terms(p_diff, t_no) + jnp.float32(lambda_reg) * jnp.abs(alpha)

    def rowsum(x):
        # (block_rows, 128) -> (8, 128) partial via a VPU add tree; the
        # cross-lane reduction happens once, in plain JAX, after the kernel.
        return x.reshape(-1, _SUBLANE, _LANE).sum(axis=0)

    out_ref[0, 0] = rowsum(term_other)
    out_ref[0, 1] = rowsum(mask * fused)
    out_ref[0, 2] = rowsum(mask)


@functools.partial(jax.jit, static_argnames=("lambda_reg",))
def loss_pallas(pred, target, batch_alphas, *, lambda_reg):
    """pred = (z_1o, z_1p, z_2o, z_2p), each (B, 1); target (B,) int; alphas (B,)."""
    z1o, z1p, z2o, z2p = pred
    B = z1o.shape[0]

    rows = max(_SUBLANE, -(-B // _LANE))            # ceil(B / 128) lane-rows
    rows = -(-rows // _SUBLANE) * _SUBLANE          # pad to a multiple of 8 sublanes
    block_rows = min(rows, _MAX_BLOCK_ROWS)
    rows = -(-rows // block_rows) * block_rows      # grid divides evenly
    padded = rows * _LANE
    pad = padded - B
    num_blocks = rows // block_rows

    def prep(x):
        x = jnp.reshape(x, (B,)).astype(jnp.float32)
        if pad:
            x = jnp.pad(x, (0, pad))
        return x.reshape(rows, _LANE)

    kernel = functools.partial(_loss_kernel, lambda_reg=float(lambda_reg),
                               n_valid=B, block_rows=block_rows)

    in_spec = pl.BlockSpec((block_rows, _LANE), lambda i: (i, 0))
    partials = pl.pallas_call(
        kernel,
        out_shape=jax.ShapeDtypeStruct((num_blocks, 3, _SUBLANE, _LANE),
                                       jnp.float32),
        grid_spec=pltpu.PrefetchScalarGridSpec(
            num_scalar_prefetch=0,
            grid=(num_blocks,),
            in_specs=[in_spec] * 6,
            out_specs=pl.BlockSpec((1, 3, _SUBLANE, _LANE),
                                   lambda i: (i, 0, 0, 0)),
        ),
        compiler_params=pltpu.CompilerParams(
            dimension_semantics=("parallel",),
            vmem_limit_bytes=48 * 1024 * 1024),
    )(prep(z1o), prep(z1p), prep(z2o), prep(z2p), prep(target),
      prep(batch_alphas))

    sums = jnp.sum(partials, axis=(0, 2, 3))        # [sum_other, sum_fused, count]
    bce_other = sums[0] / jnp.float32(B)
    count = sums[2]
    # PyTorch: empty-mask BCE / reg means are NaN -> contribute 0.  With the
    # -100 log clamp, count == 0 is the only NaN source, so gate on it.
    masked_term = jnp.where(count > 0.0, sums[1] / jnp.maximum(count, 1.0), 0.0)
    return bce_other + masked_term


def loss_reference(pred, target, batch_alphas, lambda_reg):
    """Pure-JAX reference mirroring the PyTorch forward (for validation)."""
    z1o, z1p, z2o, z2p = (p[:, 0].astype(jnp.float32) for p in pred)
    tgt = target.astype(jnp.int32)
    alpha = batch_alphas.astype(jnp.float32)
    sig = lambda x: 1.0 / (1.0 + jnp.exp(-x))

    p_other = 1.0 - sig(-z1o) * sig(-z2o)
    t_other = (tgt == 3).astype(jnp.float32)
    loss = jnp.mean(_bce_terms(p_other, t_other))

    mask = (tgt != 3).astype(jnp.float32)
    count = jnp.sum(mask)
    p_diff = sig((z1p - z2p) * jnp.exp2(alpha))
    t_no = jnp.where(tgt == 0, 1.0, jnp.where(tgt == 1, 0.5, 0.0))
    bce_diff = jnp.sum(mask * _bce_terms(p_diff, t_no)) / jnp.maximum(count, 1.0)
    bce_diff = jnp.where(count > 0, bce_diff, 0.0)

    reg = jnp.sum(mask * (lambda_reg * jnp.abs(alpha))) / jnp.maximum(count, 1.0)
    reg = jnp.where(count > 0, reg, 0.0)
    return loss + bce_diff + reg


def _make_inputs(key, B):
    k1, k2, k3, k4, k5, k6 = jax.random.split(key, 6)
    z1o = jax.random.normal(k1, (B, 1), jnp.float32)
    z1p = jax.random.normal(k2, (B, 1), jnp.float32)
    z2o = jax.random.normal(k3, (B, 1), jnp.float32)
    z2p = jax.random.normal(k4, (B, 1), jnp.float32)
    target = jax.random.randint(k5, (B,), 0, 4, jnp.int32)   # values 0..3
    batch_alphas = jax.random.normal(k6, (B,), jnp.float32)
    return (z1o, z1p, z2o, z2p), target, batch_alphas


if __name__ == "__main__":
    lambda_reg = 0.01
    key = jax.random.PRNGKey(0)

    # Case 1: the small module-shaped case (B=8).
    pred, target, batch_alphas = _make_inputs(key, 8)
    out = jax.block_until_ready(
        loss_pallas(pred, target, batch_alphas, lambda_reg=lambda_reg))
    ref = loss_reference(pred, target, batch_alphas, lambda_reg)
    assert jnp.isfinite(out), "loss is not finite"
    assert jnp.allclose(out, ref, rtol=1e-4, atol=1e-4), (out, ref)

    # Case 2: a slightly larger batch that exercises lane/sublane padding.
    pred2, target2, alphas2 = _make_inputs(jax.random.PRNGKey(1), 300)
    out2 = jax.block_until_ready(
        loss_pallas(pred2, target2, alphas2, lambda_reg=lambda_reg))
    ref2 = loss_reference(pred2, target2, alphas2, lambda_reg)
    assert jnp.allclose(out2, ref2, rtol=1e-4, atol=1e-4), (out2, ref2)

    # Case 3: all targets == 3 (empty mask -> NaN-guard path contributes 0).
    target3 = jnp.full((8,), 3, jnp.int32)
    out3 = jax.block_until_ready(
        loss_pallas(pred, target3, batch_alphas, lambda_reg=lambda_reg))
    ref3 = loss_reference(pred, target3, batch_alphas, lambda_reg)
    assert jnp.allclose(out3, ref3, rtol=1e-4, atol=1e-4), (out3, ref3)

    print("KERNEL_OK")
</pallas_src>

<mosaic_0001>
module attributes {stable_mosaic.version = 11 : i64} {
  func.func @_loss_kernel(%arg0: i32, %arg1: memref<8x128xf32, #tpu.memory_space<vmem>>, %arg2: memref<8x128xf32, #tpu.memory_space<vmem>>, %arg3: memref<8x128xf32, #tpu.memory_space<vmem>>, %arg4: memref<8x128xf32, #tpu.memory_space<vmem>>, %arg5: memref<8x128xf32, #tpu.memory_space<vmem>>, %arg6: memref<8x128xf32, #tpu.memory_space<vmem>>, %arg7: memref<1x3x8x128xf32, #tpu.memory_space<vmem>>) attributes {dimension_semantics = [#tpu.dimension_semantics<parallel>], iteration_bounds = array<i64: 1>, scalar_prefetch = 0 : i64, scratch_operands = 0 : i64, tpu.core_type = #tpu.core_type<tc>, window_params = [{transform_indices = @transform_0, window_bounds = array<i64: 8, 128>}, {transform_indices = @transform_1, window_bounds = array<i64: 8, 128>}, {transform_indices = @transform_2, window_bounds = array<i64: 8, 128>}, {transform_indices = @transform_3, window_bounds = array<i64: 8, 128>}, {transform_indices = @transform_4, window_bounds = array<i64: 8, 128>}, {transform_indices = @transform_5, window_bounds = array<i64: 8, 128>}, {transform_indices = @transform_6, window_bounds = array<i64: 1, 3, 8, 128>}]} {
    %c0 = arith.constant 0 : index
    %c0_0 = arith.constant 0 : index
    %0 = vector.load %arg1[%c0, %c0_0] : memref<8x128xf32, #tpu.memory_space<vmem>>, vector<8x128xf32>
    %c0_1 = arith.constant 0 : index
    %c0_2 = arith.constant 0 : index
    %1 = vector.load %arg2[%c0_1, %c0_2] : memref<8x128xf32, #tpu.memory_space<vmem>>, vector<8x128xf32>
    %c0_3 = arith.constant 0 : index
    %c0_4 = arith.constant 0 : index
    %2 = vector.load %arg3[%c0_3, %c0_4] : memref<8x128xf32, #tpu.memory_space<vmem>>, vector<8x128xf32>
    %c0_5 = arith.constant 0 : index
    %c0_6 = arith.constant 0 : index
    %3 = vector.load %arg4[%c0_5, %c0_6] : memref<8x128xf32, #tpu.memory_space<vmem>>, vector<8x128xf32>
    %c0_7 = arith.constant 0 : index
    %c0_8 = arith.constant 0 : index
    %4 = vector.load %arg5[%c0_7, %c0_8] : memref<8x128xf32, #tpu.memory_space<vmem>>, vector<8x128xf32>
    %c0_9 = arith.constant 0 : index
    %c0_10 = arith.constant 0 : index
    %5 = vector.load %arg6[%c0_9, %c0_10] : memref<8x128xf32, #tpu.memory_space<vmem>>, vector<8x128xf32>
    %6 = tpu.iota {dimensions = array<i32: 0>} : vector<8x128xi32>
    %7 = tpu.iota {dimensions = array<i32: 1>} : vector<8x128xi32>
    %c8_i32 = arith.constant 8 : i32
    %8 = arith.muli %arg0, %c8_i32 : i32
    %9 = vector.broadcast %8 : i32 to vector<8x128xi32>
    %10 = arith.addi %9, %6 : vector<8x128xi32>
    %c128_i32 = arith.constant 128 : i32
    %11 = vector.broadcast %c128_i32 : i32 to vector<8x128xi32>
    %12 = arith.muli %10, %11 : vector<8x128xi32>
    %13 = arith.addi %12, %7 : vector<8x128xi32>
    %c8_i32_11 = arith.constant 8 : i32
    %14 = vector.broadcast %c8_i32_11 : i32 to vector<8x128xi32>
    %15 = arith.cmpi slt, %13, %14 : vector<8x128xi32>
    %16 = arith.extui %15 : vector<8x128xi1> to vector<8x128xi32>
    %17 = arith.sitofp %16 : vector<8x128xi32> to vector<8x128xf32>
    %cst = arith.constant 0.000000e+00 : f32
    %18 = vector.broadcast %cst : f32 to vector<8x128xf32>
    %19 = arith.subf %18, %0 : vector<8x128xf32>
    %cst_12 = arith.constant 5.000000e-01 : f32
    %20 = vector.broadcast %cst_12 : f32 to vector<8x128xf32>
    %21 = arith.mulf %20, %19 : vector<8x128xf32>
    %22 = math.tanh %21 : vector<8x128xf32>
    %cst_13 = arith.constant 1.000000e+00 : f32
    %23 = vector.broadcast %cst_13 : f32 to vector<8x128xf32>
    %24 = arith.addf %22, %23 : vector<8x128xf32>
    %cst_14 = arith.constant 5.000000e-01 : f32
    %25 = vector.broadcast %cst_14 : f32 to vector<8x128xf32>
    %26 = arith.mulf %25, %24 : vector<8x128xf32>
    %cst_15 = arith.constant 0.000000e+00 : f32
    %27 = vector.broadcast %cst_15 : f32 to vector<8x128xf32>
    %28 = arith.subf %27, %2 : vector<8x128xf32>
    %cst_16 = arith.constant 5.000000e-01 : f32
    %29 = vector.broadcast %cst_16 : f32 to vector<8x128xf32>
    %30 = arith.mulf %29, %28 : vector<8x128xf32>
    %31 = math.tanh %30 : vector<8x128xf32>
    %cst_17 = arith.constant 1.000000e+00 : f32
    %32 = vector.broadcast %cst_17 : f32 to vector<8x128xf32>
    %33 = arith.addf %31, %32 : vector<8x128xf32>
    %cst_18 = arith.constant 5.000000e-01 : f32
    %34 = vector.broadcast %cst_18 : f32 to vector<8x128xf32>
    %35 = arith.mulf %34, %33 : vector<8x128xf32>
    %36 = arith.mulf %26, %35 : vector<8x128xf32>
    %cst_19 = arith.constant 1.000000e+00 : f32
    %37 = vector.broadcast %cst_19 : f32 to vector<8x128xf32>
    %38 = arith.subf %37, %36 : vector<8x128xf32>
    %cst_20 = arith.constant 3.000000e+00 : f32
    %39 = vector.broadcast %cst_20 : f32 to vector<8x128xf32>
    %40 = arith.cmpf oeq, %4, %39 : vector<8x128xf32>
    %41 = arith.extui %40 : vector<8x128xi1> to vector<8x128xi32>
    %42 = arith.sitofp %41 : vector<8x128xi32> to vector<8x128xf32>
    %43 = math.log %38 : vector<8x128xf32>
    %cst_21 = arith.constant -1.000000e+02 : f32
    %44 = vector.broadcast %cst_21 : f32 to vector<8x128xf32>
    %45 = arith.maximumf %43, %44 : vector<8x128xf32>
    %cst_22 = arith.constant 1.000000e+00 : f32
    %46 = vector.broadcast %cst_22 : f32 to vector<8x128xf32>
    %47 = arith.subf %46, %38 : vector<8x128xf32>
    %48 = math.log %47 : vector<8x128xf32>
    %cst_23 = arith.constant -1.000000e+02 : f32
    %49 = vector.broadcast %cst_23 : f32 to vector<8x128xf32>
    %50 = arith.maximumf %48, %49 : vector<8x128xf32>
    %51 = arith.mulf %42, %45 : vector<8x128xf32>
    %cst_24 = arith.constant 1.000000e+00 : f32
    %52 = vector.broadcast %cst_24 : f32 to vector<8x128xf32>
    %53 = arith.subf %52, %42 : vector<8x128xf32>
    %54 = arith.mulf %53, %50 : vector<8x128xf32>
    %55 = arith.addf %51, %54 : vector<8x128xf32>
    %cst_25 = arith.constant 0.000000e+00 : f32
    %56 = vector.broadcast %cst_25 : f32 to vector<8x128xf32>
    %57 = arith.subf %56, %55 : vector<8x128xf32>
    %58 = arith.mulf %17, %57 : vector<8x128xf32>
    %cst_26 = arith.constant 3.000000e+00 : f32
    %59 = vector.broadcast %cst_26 : f32 to vector<8x128xf32>
    %60 = arith.cmpf one, %4, %59 : vector<8x128xf32>
    %61 = arith.extui %60 : vector<8x128xi1> to vector<8x128xi32>
    %62 = arith.sitofp %61 : vector<8x128xi32> to vector<8x128xf32>
    %63 = arith.mulf %17, %62 : vector<8x128xf32>
    %cst_27 = arith.constant 0.693147182 : f32
    %64 = vector.broadcast %cst_27 : f32 to vector<8x128xf32>
    %65 = arith.mulf %5, %64 : vector<8x128xf32>
    %66 = math.exp %65 : vector<8x128xf32>
    %67 = arith.subf %1, %3 : vector<8x128xf32>
    %68 = arith.mulf %67, %66 : vector<8x128xf32>
    %cst_28 = arith.constant 5.000000e-01 : f32
    %69 = vector.broadcast %cst_28 : f32 to vector<8x128xf32>
    %70 = arith.mulf %69, %68 : vector<8x128xf32>
    %71 = math.tanh %70 : vector<8x128xf32>
    %cst_29 = arith.constant 1.000000e+00 : f32
    %72 = vector.broadcast %cst_29 : f32 to vector<8x128xf32>
    %73 = arith.addf %71, %72 : vector<8x128xf32>
    %cst_30 = arith.constant 5.000000e-01 : f32
    %74 = vector.broadcast %cst_30 : f32 to vector<8x128xf32>
    %75 = arith.mulf %74, %73 : vector<8x128xf32>
    %cst_31 = arith.constant 0.000000e+00 : f32
    %76 = vector.broadcast %cst_31 : f32 to vector<8x128xf32>
    %77 = arith.cmpf oeq, %4, %76 : vector<8x128xf32>
    %cst_32 = arith.constant 1.000000e+00 : f32
    %78 = vector.broadcast %cst_32 : f32 to vector<8x128xf32>
    %79 = arith.cmpf oeq, %4, %78 : vector<8x128xf32>
    %cst_33 = arith.constant 5.000000e-01 : f32
    %cst_34 = arith.constant 0.000000e+00 : f32
    %80 = vector.broadcast %cst_33 : f32 to vector<8x128xf32>
    %81 = vector.broadcast %cst_34 : f32 to vector<8x128xf32>
    %82 = arith.select %79, %80, %81 : vector<8x128xi1>, vector<8x128xf32>
    %cst_35 = arith.constant 1.000000e+00 : f32
    %83 = vector.broadcast %cst_35 : f32 to vector<8x128xf32>
    %84 = arith.select %77, %83, %82 : vector<8x128xi1>, vector<8x128xf32>
    %85 = math.log %75 : vector<8x128xf32>
    %cst_36 = arith.constant -1.000000e+02 : f32
    %86 = vector.broadcast %cst_36 : f32 to vector<8x128xf32>
    %87 = arith.maximumf %85, %86 : vector<8x128xf32>
    %cst_37 = arith.constant 1.000000e+00 : f32
    %88 = vector.broadcast %cst_37 : f32 to vector<8x128xf32>
    %89 = arith.subf %88, %75 : vector<8x128xf32>
    %90 = math.log %89 : vector<8x128xf32>
    %cst_38 = arith.constant -1.000000e+02 : f32
    %91 = vector.broadcast %cst_38 : f32 to vector<8x128xf32>
    %92 = arith.maximumf %90, %91 : vector<8x128xf32>
    %93 = arith.mulf %84, %87 : vector<8x128xf32>
    %cst_39 = arith.constant 1.000000e+00 : f32
    %94 = vector.broadcast %cst_39 : f32 to vector<8x128xf32>
    %95 = arith.subf %94, %84 : vector<8x128xf32>
    %96 = arith.mulf %95, %92 : vector<8x128xf32>
    %97 = arith.addf %93, %96 : vector<8x128xf32>
    %cst_40 = arith.constant 0.000000e+00 : f32
    %98 = vector.broadcast %cst_40 : f32 to vector<8x128xf32>
    %99 = arith.subf %98, %97 : vector<8x128xf32>
    %100 = math.absf %5 : vector<8x128xf32>
    %cst_41 = arith.constant 0.00999999977 : f32
    %101 = vector.broadcast %cst_41 : f32 to vector<8x128xf32>
    %102 = arith.mulf %101, %100 : vector<8x128xf32>
    %103 = arith.addf %99, %102 : vector<8x128xf32>
    %104 = vector.shape_cast %58 : vector<8x128xf32> to vector<1x8x128xf32>
    %cst_42 = arith.constant dense<0.000000e+00> : vector<8x128xf32>
    %105 = vector.multi_reduction <add>, %104, %cst_42 [0] : vector<1x8x128xf32> to vector<8x128xf32>
    %c0_43 = arith.constant 0 : index
    %c0_44 = arith.constant 0 : index
    %c0_45 = arith.constant 0 : index
    %c0_46 = arith.constant 0 : index
    %106 = vector.load %arg7[%c0_43, %c0_44, %c0_45, %c0_46] : memref<1x3x8x128xf32, #tpu.memory_space<vmem>>, vector<1x1x8x128xf32>
    %107 = vector.shape_cast %106 : vector<1x1x8x128xf32> to vector<8x128xf32>
    %108 = vector.shape_cast %105 : vector<8x128xf32> to vector<1x1x8x128xf32>
    tpu.vector_store %arg7[%c0_43, %c0_44, %c0_45, %c0_46], %108 {strides = array<i32>} : memref<1x3x8x128xf32, #tpu.memory_space<vmem>>, vector<1x1x8x128xf32>,
    %109 = arith.mulf %63, %103 : vector<8x128xf32>
    %110 = vector.shape_cast %109 : vector<8x128xf32> to vector<1x8x128xf32>
    %cst_47 = arith.constant dense<0.000000e+00> : vector<8x128xf32>
    %111 = vector.multi_reduction <add>, %110, %cst_47 [0] : vector<1x8x128xf32> to vector<8x128xf32>
    %c0_48 = arith.constant 0 : index
    %c1 = arith.constant 1 : index
    %c0_49 = arith.constant 0 : index
    %c0_50 = arith.constant 0 : index
    %112 = vector.load %arg7[%c0_48, %c1, %c0_49, %c0_50] : memref<1x3x8x128xf32, #tpu.memory_space<vmem>>, vector<1x1x8x128xf32>
    %113 = vector.shape_cast %112 : vector<1x1x8x128xf32> to vector<8x128xf32>
    %114 = vector.shape_cast %111 : vector<8x128xf32> to vector<1x1x8x128xf32>
    tpu.vector_store %arg7[%c0_48, %c1, %c0_49, %c0_50], %114 {strides = array<i32>} : memref<1x3x8x128xf32, #tpu.memory_space<vmem>>, vector<1x1x8x128xf32>,
    %115 = vector.shape_cast %63 : vector<8x128xf32> to vector<1x8x128xf32>
    %cst_51 = arith.constant dense<0.000000e+00> : vector<8x128xf32>
    %116 = vector.multi_reduction <add>, %115, %cst_51 [0] : vector<1x8x128xf32> to vector<8x128xf32>
    %c0_52 = arith.constant 0 : index
    %c2 = arith.constant 2 : index
    %c0_53 = arith.constant 0 : index
    %c0_54 = arith.constant 0 : index
    %117 = vector.load %arg7[%c0_52, %c2, %c0_53, %c0_54] : memref<1x3x8x128xf32, #tpu.memory_space<vmem>>, vector<1x1x8x128xf32>
    %118 = vector.shape_cast %117 : vector<1x1x8x128xf32> to vector<8x128xf32>
    %119 = vector.shape_cast %116 : vector<8x128xf32> to vector<1x1x8x128xf32>
    tpu.vector_store %arg7[%c0_52, %c2, %c0_53, %c0_54], %119 {strides = array<i32>} : memref<1x3x8x128xf32, #tpu.memory_space<vmem>>, vector<1x1x8x128xf32>,
    return
  }
  func.func @transform_0(%arg0: i32) -> (i32, i32) {
    %c0_i32 = arith.constant 0 : i32
    %c0_i32_0 = arith.constant 0 : i32
    return %arg0, %c0_i32 : i32, i32
  }
  func.func @transform_1(%arg0: i32) -> (i32, i32) {
    %c0_i32 = arith.constant 0 : i32
    %c0_i32_0 = arith.constant 0 : i32
    return %arg0, %c0_i32 : i32, i32
  }
  func.func @transform_2(%arg0: i32) -> (i32, i32) {
    %c0_i32 = arith.constant 0 : i32
    %c0_i32_0 = arith.constant 0 : i32
    return %arg0, %c0_i32 : i32, i32
  }
  func.func @transform_3(%arg0: i32) -> (i32, i32) {
    %c0_i32 = arith.constant 0 : i32
    %c0_i32_0 = arith.constant 0 : i32
    return %arg0, %c0_i32 : i32, i32
  }
  func.func @transform_4(%arg0: i32) -> (i32, i32) {
    %c0_i32 = arith.constant 0 : i32
    %c0_i32_0 = arith.constant 0 : i32
    return %arg0, %c0_i32 : i32, i32
  }
  func.func @transform_5(%arg0: i32) -> (i32, i32) {
    %c0_i32 = arith.constant 0 : i32
    %c0_i32_0 = arith.constant 0 : i32
    return %arg0, %c0_i32 : i32, i32
  }
  func.func @transform_6(%arg0: i32) -> (i32, i32, i32, i32) {
    %c0_i32 = arith.constant 0 : i32
    %c0_i32_0 = arith.constant 0 : i32
    %c0_i32_1 = arith.constant 0 : i32
    %c0_i32_2 = arith.constant 0 : i32
    return %arg0, %c0_i32, %c0_i32_0, %c0_i32_1 : i32, i32, i32, i32
  }
}

</mosaic_0001>

<bundles_post_ra>
// kernel: loss_pallas.1
= control target key start
LH: loop header
LB: loop body
LE: loop exit
PB: predicated region body
PF: predicated region fallthrough
CT: control target
= control target key end

     0   :  { %v29_v0 = vlaneseq  ;;  %v136_v14 = vmov 0.0   ;;  %s209_s0 = inlined_call_operand.vmem [shape: f32[8,128], index: 0, kind: input, shape index: {}]   ;;  %s210_s2 = inlined_call_operand.vmem [shape: f32[8,128], index: 2, kind: input, shape index: {}]   ;;  %s211_s4 = inlined_call_operand.vmem [shape: f32[8,128], index: 4, kind: input, shape index: {}]   ;;  %s212_s5 = inlined_call_operand.vmem [shape: f32[8,128], index: 5, kind: input, shape index: {}]   ;;  %s213_s6 = inlined_call_operand.vmem [shape: f32[1,3,8,128], index: 6, kind: output, shape index: {}]   ;;  %s214_s1 = inlined_call_operand.vmem [shape: f32[8,128], index: 1, kind: input, shape index: {}]   ;;  %s215_s3 = inlined_call_operand.vmem [shape: f32[8,128], index: 3, kind: input, shape index: {}]  }
   0x1   :  { %v23_v1 = vld [vmem:[%s209_s0] sm:$0xff] }
   0x2   :  { %v25_v2 = vld [vmem:[%s210_s2] sm:$0xff]  ;;  %v30_v3 = vshrl.u32 %v29_v0, 7  ;;  %v32_v4 = vand.u32 127, %v29_v0  ;;  %v41_v5 = vsub.f32 0.0, %v23_v1 }
   0x3   :  { %v46_v6 = vsub.f32 0.0, %v25_v2  ;;  %v181_v7 = vld [vmem:[%s211_s4] sm:$0xff] }
   0x4   :  { %v186_v8 = vld [vmem:[%s212_s5] sm:$0xff]  ;;  %v36_v9 = vmul.u32 128, %v30_v3  ;;  %v42_v10 = vmul.f32 0.5, %v41_v5  ;;  %vm69_vm0 = vcmp.ne.f32.partialorder %v181_v7, 3.0  ;;  %vm53_vm2 = vcmp.eq.f32.partialorder %v181_v7, 3.0 }
   0x5   :  { %v47_v11 = vmul.f32 0.5, %v46_v6  ;;  %v73_v12 = vmul.f32 0.6931472, %v186_v8  ;;  %v116_v15 = vsel %vm69_vm0, 1.0, %v136_v14  ;;  %v24_v19 = vld [vmem:[%s214_s1] sm:$0xff]  ;;  %v115_v35 = vsel %vm53_vm2, 1.0, %v136_v14 }
   0x6   :  { %v37_v13 = vadd.s32 %v36_v9, %v32_v4  ;;  %120 = vtanh.f32 %v42_v10  ;;  %v26_v20 = vld [vmem:[%s215_s3] sm:$0xff]  ;;  %v64_v41 = vsub.f32 1.0, %v115_v35  ;;  %vm83_vm3 = vcmp.eq.f32.partialorder %v181_v7, 1.0 }
   0x7   :  { %122 = vtanh.f32 %v47_v11  ;;  %v74_v16 = vmul.f32 1.442695, %v73_v12  ;;  %v76_v22 = vsub.f32 %v24_v19, %v26_v20  ;;  %vm82_vm4 = vcmp.eq.f32.partialorder %v181_v7, 0.0 }
   0x8   :  { %vm38_vm1 = vcmp.lt.s32.totalorder %v37_v13, 8  ;;  %v84_v49 = vsel %vm83_vm3, 0.5, %v136_v14  ;;  %v98_v61 = vand.u32 2147483647, %v186_v8 }
   0x9   :  { %v114_v17 = vsel %vm38_vm1, 1.0, %v136_v14  ;;  %124 = vpow2.f32 %v74_v16  ;;  %v85_v53 = vsel %vm82_vm4, 1.0, %v84_v49 }
   0xa   :  { %v72_v18 = vmul.f32 %v116_v15, %v114_v17  ;;  %v94_v58 = vsub.f32 1.0, %v85_v53  ;;  %v99_v0 = vmul.f32 0.01, %v98_v61 }
   0xc   :  { %118 = vst [vmem:[%s213_s6 + $0x10] sm:$0xff] %v72_v18 }
  0x10   :  { %v121_v21 = vpop.eup %120 }
  0x11   :  { %v123_v23 = vpop.eup %122  ;;  %v44_v24 = vadd.f32 1.0, %v121_v21 }
  0x12   :  { %v49_v25 = vadd.f32 1.0, %v123_v23 }
  0x13   :  { %v125_v26 = vpop.eup %124  ;;  %v45_v27 = vmul.f32 0.5, %v44_v24 }
  0x14   :  { %v50_v28 = vmul.f32 0.5, %v49_v25  ;;  %v77_v29 = vmul.f32 %v125_v26, %v76_v22 }
  0x16   :  { %v51_v30 = vmul.f32 %v50_v28, %v45_v27  ;;  %v78_v31 = vmul.f32 0.5, %v77_v29 }
  0x18   :  { %v52_v32 = vsub.f32 1.0, %v51_v30  ;;  %126 = vtanh.f32 %v78_v31 }
  0x1a   :  { %128 = vlog2.f32 %v52_v32  ;;  %v59_v33 = vsub.f32 1.0, %v52_v32 }
  0x1c   :  { %130 = vlog2.f32 %v59_v33 }
  0x22   :  { %v127_v34 = vpop.eup %126 }
  0x23   :  { %v80_v36 = vadd.f32 1.0, %v127_v34 }
  0x24   :  { %v129_v37 = vpop.eup %128 }
  0x25   :  { %v57_v38 = vmul.f32 0.6931472, %v129_v37  ;;  %v81_v39 = vmul.f32 0.5, %v80_v36 }
  0x26   :  { %v131_v40 = vpop.eup %130 }
  0x27   :  { %v58_v42 = vmax.f32 %v57_v38, -100.0  ;;  %v61_v43 = vmul.f32 0.6931472, %v131_v40  ;;  %132 = vlog2.f32 %v81_v39  ;;  %v89_v44 = vsub.f32 1.0, %v81_v39 }
  0x29   :  { %v62_v45 = vmax.f32 %v61_v43, -100.0  ;;  %v63_v46 = vmul.f32 %v115_v35, %v58_v42  ;;  %134 = vlog2.f32 %v89_v44 }
  0x2b   :  { %v65_v47 = vmul.f32 %v64_v41, %v62_v45 }
  0x2d   :  { %v66_v48 = vadd.f32 %v65_v47, %v63_v46 }
  0x2f   :  { %v67_v50 = vsub.f32 0.0, %v66_v48 }
  0x31   :  { %v133_v51 = vpop.eup %132  ;;  %v68_v52 = vmul.f32 %v114_v17, %v67_v50 }
  0x32   :  { %v87_v54 = vmul.f32 0.6931472, %v133_v51 }
  0x33   :  { %v135_v55 = vpop.eup %134  ;;  %102 = vst [vmem:[%s213_s6] sm:$0xff] %v68_v52 }
  0x34   :  { %v88_v56 = vmax.f32 %v87_v54, -100.0  ;;  %v91_v57 = vmul.f32 0.6931472, %v135_v55 }
  0x36   :  { %v92_v59 = vmax.f32 %v91_v57, -100.0  ;;  %v93_v60 = vmul.f32 %v88_v56, %v85_v53 }
  0x38   :  { %v95_v62 = vmul.f32 %v94_v58, %v92_v59 }
  0x3a   :  { %v96_v63 = vadd.f32 %v95_v62, %v93_v60 }
  0x3c   :  { %v97_v1 = vsub.f32 0.0, %v96_v63 }
  0x3e   :  { %v100_v2 = vadd.f32 %v99_v0, %v97_v1 }
  0x40   :  { %v103_v3 = vmul.f32 %v100_v2, %v72_v18 }
  0x42   :  { %117 = vst [vmem:[%s213_s6 + $0x8] sm:$0xff] %v103_v3 }

</bundles_post_ra>
